<compile_context>
chip_gen: v7x
topology: tpu7x:2x2x1
jax: 0.10.0
libtpu: 0.0.40
codegen_flags: <defaults>
</compile_context>

<pallas_src>
import jax
import jax.numpy as jnp
from jax.experimental import pallas as pl
from jax.experimental.pallas import tpu as pltpu


def _round_up(x, m):
    return ((x + m - 1) // m) * m


def _softplus(x):
    # Numerically stable softplus, same formula used in kernel and reference.
    return jnp.maximum(x, 0.0) + jnp.log1p(jnp.exp(-jnp.abs(x)))


def encoder_kernel(state_ref, eps_ref, w1_ref, b1_ref, wh_ref, bh_ref, out_ref):
    # Hidden layer: bf16 MXU matmul, f32 accumulate, f32 bias + ReLU.
    h = jnp.dot(state_ref[...], w1_ref[...],
                preferred_element_type=jnp.float32) + b1_ref[...]
    h = jnp.maximum(h, 0.0)

    # Fused heads: one lane-dense (TB, 2Z) result; lanes [0:Z]=mu, [Z:2Z]=s.
    t = jnp.dot(h.astype(wh_ref.dtype), wh_ref[...],
                preferred_element_type=jnp.float32) + bh_ref[...]

    z_units = eps_ref.shape[-1]
    mu = t[:, :z_units]
    s = t[:, z_units:]

    # softplus only over the Z sigma lanes (EUP slot; half the old work).
    sigma = _softplus(s)

    # Reparameterize: z = mu + eps * sigma (eps streamed as bf16, cast to f32).
    z = mu + eps_ref[...].astype(jnp.float32) * sigma

    # Full-width [z | sigma] slab: every lane useful, unmasked lane-dense store.
    out_ref[...] = jnp.concatenate([z, sigma], axis=-1).astype(out_ref.dtype)


def prepare_params(w1, b1, wmu, wsig, bsig, *, compute_dtype=jnp.bfloat16):
    """One-time parameter prep: pack the two heads and cast MXU operands.

    Weights are (in_features, out_features) so the kernel computes x @ W
    (equivalent to PyTorch's x @ W.T with its (out, in) layout).
    """
    fc1 = w1.shape[1]
    z = wmu.shape[1]
    w1_c = w1.astype(compute_dtype)                                   # (S, FC1)
    b1_f = b1.reshape(1, fc1).astype(jnp.float32)                     # (1, FC1)
    w_heads_c = jnp.concatenate([wmu, wsig], axis=1).astype(compute_dtype)  # (FC1, 2Z)
    b_heads_f = jnp.concatenate(
        [jnp.zeros((1, z), jnp.float32),          # mu head is bias-free
         bsig.reshape(1, z).astype(jnp.float32)], axis=1)             # (1, 2Z)
    return w1_c, b1_f, w_heads_c, b_heads_f


def encoder_forward(state, params, eps, *, block_b=1024, out_dtype=jnp.bfloat16):
    """Returns (z, sigma): z = mu + eps * softplus(s), h = relu(state @ w1 + b1).

    The kernel writes a lane-dense (B, 2Z) [z | sigma] slab; the z / sigma
    slices below fuse with the consumer under jit.
    """
    w1_c, b1_f, wh_c, bh_f = params
    B, S = state.shape
    FC1 = w1_c.shape[1]
    two_z = wh_c.shape[1]
    Z = two_z // 2
    assert eps.shape == (B, Z), (eps.shape, (B, Z))
    compute_dtype = w1_c.dtype

    state_c = state.astype(compute_dtype)
    eps_c = eps.astype(compute_dtype)

    # ---- Batch tiling: grid of >= 2 steps whenever B allows it (v7x 2 TCs) --
    B8 = _round_up(B, 8)
    TB = min(block_b, max(8, _round_up((B8 + 1) // 2, 8)))
    B_pad = _round_up(B, TB)
    if B_pad != B:
        pad = B_pad - B
        state_c = jnp.pad(state_c, ((0, pad), (0, 0)))
        eps_c = jnp.pad(eps_c, ((0, pad), (0, 0)))

    grid = (B_pad // TB,)
    stream = lambda shape: pl.BlockSpec(shape, lambda i: (i, 0))
    resident = lambda shape: pl.BlockSpec(shape, lambda i: (0, 0))

    out_bytes = jnp.dtype(out_dtype).itemsize
    cost = pl.CostEstimate(
        flops=2 * B_pad * (S * FC1 + FC1 * two_z),
        transcendentals=B_pad * Z,
        bytes_accessed=(state_c.size * 2 + eps_c.size * 2
                        + w1_c.size * 2 + wh_c.size * 2
                        + b1_f.size * 4 + bh_f.size * 4
                        + B_pad * two_z * out_bytes),
    )

    slab = pl.pallas_call(
        encoder_kernel,
        out_shape=jax.ShapeDtypeStruct((B_pad, two_z), out_dtype),
        grid=grid,
        in_specs=[stream((TB, S)),            # state tile   (streamed)
                  stream((TB, Z)),            # eps tile     (streamed, bf16)
                  resident((S, FC1)),         # w1           (resident)
                  resident((1, FC1)),         # b1           (resident)
                  resident((FC1, two_z)),     # packed head weights
                  resident((1, two_z))],      # packed head bias
        out_specs=stream((TB, two_z)),
        compiler_params=pltpu.CompilerParams(
            dimension_semantics=("parallel",)),
        cost_estimate=cost,
    )(state_c, eps_c, w1_c, b1_f, wh_c, bh_f)

    slab = slab[:B]
    return slab[:, :Z], slab[:, Z:]


def init_params(key, state_size, fc1_units, z_units):
    # Deterministic synthetic init (uniform, roughly PyTorch's kaiming-uniform scale).
    ks = jax.random.split(key, 5)
    lim1 = 1.0 / jnp.sqrt(state_size)
    lim2 = 1.0 / jnp.sqrt(fc1_units)
    w1 = jax.random.uniform(ks[0], (state_size, fc1_units), jnp.float32, -lim1, lim1)
    b1 = jax.random.uniform(ks[1], (1, fc1_units), jnp.float32, -lim1, lim1)
    wmu = jax.random.uniform(ks[2], (fc1_units, z_units), jnp.float32, -lim2, lim2)
    wsig = jax.random.uniform(ks[3], (fc1_units, z_units), jnp.float32, -lim2, lim2)
    bsig = jax.random.uniform(ks[4], (1, z_units), jnp.float32, -lim2, lim2)
    return w1, b1, wmu, wsig, bsig


def _reference(state, eps, w1, b1, wmu, wsig, bsig, compute_dtype=jnp.bfloat16):
    """Plain-JAX reference with identical bf16-input / f32-accumulate numerics."""
    cd = compute_dtype
    h = jnp.maximum(
        jnp.dot(state.astype(cd), w1.astype(cd),
                preferred_element_type=jnp.float32) + b1, 0.0)
    h_c = h.astype(cd)
    mu = jnp.dot(h_c, wmu.astype(cd), preferred_element_type=jnp.float32)
    s = jnp.dot(h_c, wsig.astype(cd), preferred_element_type=jnp.float32) + bsig
    sigma = _softplus(s)
    z = mu + eps.astype(cd).astype(jnp.float32) * sigma
    return z, sigma


if __name__ == "__main__":
    # Small shapes consistent with the module: state_size=16, fc1_units=64,
    # z_units=64 (action_size is unused in the PyTorch forward).
    STATE, FC1, ZU = 16, 64, 64

    key = jax.random.PRNGKey(0)
    k_params, k_data = jax.random.split(key)
    w1, b1, wmu, wsig, bsig = init_params(k_params, STATE, FC1, ZU)
    params = prepare_params(w1, b1, wmu, wsig, bsig)   # one-time prep

    ok = True
    for B in (8, 40):   # single-tile case and multi-tile (grid=2) + pad case
        k_state, k_eps, k_data = jax.random.split(k_data, 3)
        state = jax.random.normal(k_state, (B, STATE), jnp.float32)
        eps = jax.random.normal(k_eps, (B, ZU), jnp.float32)

        z, sigma = encoder_forward(state, params, eps)
        jax.block_until_ready((z, sigma))
        assert z.shape == (B, ZU) and sigma.shape == (B, ZU)

        z_ref, sig_ref = _reference(state, eps, w1, b1, wmu, wsig, bsig)
        ok &= bool(jnp.allclose(z.astype(jnp.float32), z_ref, atol=5e-2, rtol=5e-2))
        ok &= bool(jnp.allclose(sigma.astype(jnp.float32), sig_ref, atol=5e-2, rtol=5e-2))
        ok &= bool(jnp.all(sigma.astype(jnp.float32) > 0.0))

    assert ok, "mismatch vs reference"
    print("KERNEL_OK")
</pallas_src>

<mosaic_0001>
module attributes {stable_mosaic.version = 11 : i64} {
  func.func @encoder_kernel(%arg0: i32, %arg1: memref<8x16xbf16, #tpu.memory_space<vmem>>, %arg2: memref<8x64xbf16, #tpu.memory_space<vmem>>, %arg3: memref<16x64xbf16, #tpu.memory_space<vmem>>, %arg4: memref<1x64xf32, #tpu.memory_space<vmem>>, %arg5: memref<64x128xbf16, #tpu.memory_space<vmem>>, %arg6: memref<1x128xf32, #tpu.memory_space<vmem>>, %arg7: memref<8x128xbf16, #tpu.memory_space<vmem>>) attributes {dimension_semantics = [#tpu.dimension_semantics<parallel>], iteration_bounds = array<i64: 1>, scalar_prefetch = 0 : i64, scratch_operands = 0 : i64, tpu.core_type = #tpu.core_type<tc>, window_params = [{transform_indices = @transform_0, window_bounds = array<i64: 8, 16>}, {transform_indices = @transform_1, window_bounds = array<i64: 8, 64>}, {pipeline_mode = #tpu.pipeline_mode<synchronous>, transform_indices = @transform_2, window_bounds = array<i64: 16, 64>}, {pipeline_mode = #tpu.pipeline_mode<synchronous>, transform_indices = @transform_3, window_bounds = array<i64: 1, 64>}, {pipeline_mode = #tpu.pipeline_mode<synchronous>, transform_indices = @transform_4, window_bounds = array<i64: 64, 128>}, {pipeline_mode = #tpu.pipeline_mode<synchronous>, transform_indices = @transform_5, window_bounds = array<i64: 1, 128>}, {transform_indices = @transform_6, window_bounds = array<i64: 8, 128>}]} {
    %c0 = arith.constant 0 : index
    %c0_0 = arith.constant 0 : index
    %0 = vector.load %arg1[%c0, %c0_0] : memref<8x16xbf16, #tpu.memory_space<vmem>>, vector<8x16xbf16>
    %c0_1 = arith.constant 0 : index
    %c0_2 = arith.constant 0 : index
    %1 = vector.load %arg3[%c0_1, %c0_2] : memref<16x64xbf16, #tpu.memory_space<vmem>>, vector<16x64xbf16>
    %cst = arith.constant dense<0.000000e+00> : vector<8x64xf32>
    %2 = tpu.matmul %0, %1, %cst {dimension_numbers = #tpu.dot_dimension_numbers<[1], [0], [0], [1], [0, 0, 1, 1], [], []>} : vector<8x16xbf16>, vector<16x64xbf16>, vector<8x64xf32> -> vector<8x64xf32>
    %c0_3 = arith.constant 0 : index
    %c0_4 = arith.constant 0 : index
    %3 = vector.load %arg4[%c0_3, %c0_4] : memref<1x64xf32, #tpu.memory_space<vmem>>, vector<1x64xf32>
    %4 = vector.broadcast %3 : vector<1x64xf32> to vector<8x64xf32>
    %5 = arith.addf %2, %4 : vector<8x64xf32>
    %cst_5 = arith.constant 0.000000e+00 : f32
    %6 = vector.broadcast %cst_5 : f32 to vector<8x64xf32>
    %7 = arith.maximumf %5, %6 : vector<8x64xf32>
    %8 = arith.truncf %7 : vector<8x64xf32> to vector<8x64xbf16>
    %c0_6 = arith.constant 0 : index
    %c0_7 = arith.constant 0 : index
    %9 = vector.load %arg5[%c0_6, %c0_7] : memref<64x128xbf16, #tpu.memory_space<vmem>>, vector<64x128xbf16>
    %cst_8 = arith.constant dense<0.000000e+00> : vector<8x128xf32>
    %10 = tpu.matmul %8, %9, %cst_8 {dimension_numbers = #tpu.dot_dimension_numbers<[1], [0], [0], [1], [0, 0, 1, 1], [], []>} : vector<8x64xbf16>, vector<64x128xbf16>, vector<8x128xf32> -> vector<8x128xf32>
    %c0_9 = arith.constant 0 : index
    %c0_10 = arith.constant 0 : index
    %11 = vector.load %arg6[%c0_9, %c0_10] : memref<1x128xf32, #tpu.memory_space<vmem>>, vector<1x128xf32>
    %12 = vector.broadcast %11 : vector<1x128xf32> to vector<8x128xf32>
    %13 = arith.addf %10, %12 : vector<8x128xf32>
    %14 = vector.extract_strided_slice %13 {offsets = [0, 0], sizes = [8, 64], strides = [1, 1]} : vector<8x128xf32> to vector<8x64xf32>
    %15 = vector.extract_strided_slice %13 {offsets = [0, 64], sizes = [8, 64], strides = [1, 1]} : vector<8x128xf32> to vector<8x64xf32>
    %cst_11 = arith.constant 0.000000e+00 : f32
    %16 = vector.broadcast %cst_11 : f32 to vector<8x64xf32>
    %17 = arith.maximumf %15, %16 : vector<8x64xf32>
    %18 = math.absf %15 : vector<8x64xf32>
    %cst_12 = arith.constant 0.000000e+00 : f32
    %19 = vector.broadcast %cst_12 : f32 to vector<8x64xf32>
    %20 = arith.subf %19, %18 : vector<8x64xf32>
    %21 = math.exp %20 : vector<8x64xf32>
    %22 = math.log1p %21 : vector<8x64xf32>
    %23 = arith.addf %17, %22 : vector<8x64xf32>
    %c0_13 = arith.constant 0 : index
    %c0_14 = arith.constant 0 : index
    %24 = vector.load %arg2[%c0_13, %c0_14] : memref<8x64xbf16, #tpu.memory_space<vmem>>, vector<8x64xbf16>
    %25 = arith.extf %24 : vector<8x64xbf16> to vector<8x64xf32>
    %26 = arith.mulf %25, %23 : vector<8x64xf32>
    %27 = arith.addf %14, %26 : vector<8x64xf32>
    %28 = tpu.concatenate %27, %23 in 1 : vector<8x64xf32>, vector<8x64xf32> -> vector<8x128xf32>
    %29 = arith.truncf %28 : vector<8x128xf32> to vector<8x128xbf16>
    %c0_15 = arith.constant 0 : index
    %c0_16 = arith.constant 0 : index
    %30 = vector.load %arg7[%c0_15, %c0_16] : memref<8x128xbf16, #tpu.memory_space<vmem>>, vector<8x128xbf16>
    tpu.vector_store %arg7[%c0_15, %c0_16], %29 {strides = array<i32>} : memref<8x128xbf16, #tpu.memory_space<vmem>>, vector<8x128xbf16>,
    return
  }
  func.func @transform_0(%arg0: i32) -> (i32, i32) {
    %c0_i32 = arith.constant 0 : i32
    %c0_i32_0 = arith.constant 0 : i32
    return %arg0, %c0_i32 : i32, i32
  }
  func.func @transform_1(%arg0: i32) -> (i32, i32) {
    %c0_i32 = arith.constant 0 : i32
    %c0_i32_0 = arith.constant 0 : i32
    return %arg0, %c0_i32 : i32, i32
  }
  func.func @transform_2(%arg0: i32) -> (i32, i32) {
    %c0_i32 = arith.constant 0 : i32
    %c0_i32_0 = arith.constant 0 : i32
    %c0_i32_1 = arith.constant 0 : i32
    return %c0_i32, %c0_i32_0 : i32, i32
  }
  func.func @transform_3(%arg0: i32) -> (i32, i32) {
    %c0_i32 = arith.constant 0 : i32
    %c0_i32_0 = arith.constant 0 : i32
    %c0_i32_1 = arith.constant 0 : i32
    return %c0_i32, %c0_i32_0 : i32, i32
  }
  func.func @transform_4(%arg0: i32) -> (i32, i32) {
    %c0_i32 = arith.constant 0 : i32
    %c0_i32_0 = arith.constant 0 : i32
    %c0_i32_1 = arith.constant 0 : i32
    return %c0_i32, %c0_i32_0 : i32, i32
  }
  func.func @transform_5(%arg0: i32) -> (i32, i32) {
    %c0_i32 = arith.constant 0 : i32
    %c0_i32_0 = arith.constant 0 : i32
    %c0_i32_1 = arith.constant 0 : i32
    return %c0_i32, %c0_i32_0 : i32, i32
  }
  func.func @transform_6(%arg0: i32) -> (i32, i32) {
    %c0_i32 = arith.constant 0 : i32
    %c0_i32_0 = arith.constant 0 : i32
    return %arg0, %c0_i32 : i32, i32
  }
}

</mosaic_0001>

<bundles_post_ra>
// kernel: tpu_custom_call.1
= control target key start
LH: loop header
LB: loop body
LE: loop exit
PB: predicated region body
PF: predicated region fallthrough
CT: control target
= control target key end

     0   :  { %11 = vsyncpa [#allocation3], 0  ;;  %s551_s0 = inlined_call_operand.hbm [shape: bf16[8,16], index: 0, kind: input, shape index: {}]   ;;  %s552_s1 = inlined_call_operand.hbm [shape: bf16[8,64], index: 1, kind: input, shape index: {}]   ;;  %s553_s2 = inlined_call_operand.hbm [shape: bf16[16,64], index: 2, kind: input, shape index: {}]   ;;  %s554_s3 = inlined_call_operand.vmem [shape: f32[1,64], index: 3, kind: input, shape index: {}]   ;;  %s555_s4 = inlined_call_operand.hbm [shape: bf16[64,128], index: 4, kind: input, shape index: {}]   ;;  %s556_s5 = inlined_call_operand.vmem [shape: f32[1,128], index: 5, kind: input, shape index: {}]   ;;  %s557_s6 = inlined_call_operand.hbm [shape: bf16[8,128], index: 6, kind: output, shape index: {}]  }
   0x1   :  { %12 = vsyncpa [#allocation6], 0 }
   0x2   :  { %13 = vsyncpa [#allocation9], 0 }
   0x3   :  { %14 = vsyncpa [#allocation4], 0  ;;  %s434_s21 = smov [#allocation5]   ;;  %s435_s23 = smov [#allocation2]  }
   0x4   :  { %s31_s22 = sshll.u32 %s434_s21, 4  ;;  %s21_s24 = sshll.u32 %s435_s23, 4  ;;  %s32_s22 = int_to_ptr.vmem [resolvable:$true] %s31_s22  ;;  %s22_s24 = int_to_ptr.vmem [resolvable:$true] %s21_s24 }
   0x5   :  { %s316_s27 = scalar_lea.hbm %s552_s1, 64 }
   0x6   :  { %p317_p0 = scmp.ne.s32.totalorder %s552_s1, %s316_s27  ;;  %p320_p1 = scmp.lt.u32.totalorder %s316_s27, %s552_s1 }
   0x8   :  { %p322_p2 = pnand %p320_p1, %p317_p0 }
   0xa   :  { %325 = shalt.err (!%p322_p2)
}
   0xb   :  { %s326_s8 = scalar_lea.vmem %s32_s22, 64  ;;  %p331_p4 = scmp.lt.s32.totalorder %s32_s22, %s32_s22 }
   0xc   :  { %p327_p3 = scmp.ne.s32.totalorder %s32_s22, %s326_s8  ;;  %p332_p5 = scmp.lt.s32.totalorder %s326_s8, %s326_s8 }
   0xe   :  { %p333_p6 = por %p332_p5, %p331_p4 }
  0x10   :  { %p334_p7 = pnand %p333_p6, %p327_p3 }
  0x12   :  { %337 = shalt.err (!%p334_p7)
}
  0x13   :  { %34 = dma.hbm_to_vmem [thread:$0]  %s552_s1, 64, %s32_s22, [#allocation6]  }
  0x14   :  { %s338_s13 = scalar_lea.hbm %s551_s0, 64 }
  0x15   :  { %p339_p8 = scmp.ne.s32.totalorder %s551_s0, %s338_s13  ;;  %p342_p9 = scmp.lt.u32.totalorder %s338_s13, %s551_s0 }
  0x17   :  { %p344_p10 = pnand %p342_p9, %p339_p8 }
  0x19   :  { %347 = shalt.err (!%p344_p10)
}
  0x1a   :  { %s348_s18 = scalar_lea.vmem %s22_s24, 64  ;;  %p353_p12 = scmp.lt.s32.totalorder %s22_s24, %s22_s24 }
  0x1b   :  { %p349_p11 = scmp.ne.s32.totalorder %s22_s24, %s348_s18  ;;  %p354_p13 = scmp.lt.s32.totalorder %s348_s18, %s348_s18 }
  0x1d   :  { %p355_p0 = por %p354_p13, %p353_p12 }
  0x1f   :  { %p356_p1 = pnand %p355_p0, %p349_p11 }
  0x21   :  { %359 = shalt.err (!%p356_p1)
}
  0x22   :  { %24 = dma.hbm_to_vmem [thread:$0]  %s551_s0, 64, %s22_s24, [#allocation3]  }
  0x23   :  { %s436_s20 = smov [#allocation7]   ;;  %s360_s25 = scalar_lea.hbm %s553_s2, 128 }
  0x24   :  { %s40_s21 = sshll.u32 %s436_s20, 4  ;;  %p361_p2 = scmp.ne.s32.totalorder %s553_s2, %s360_s25  ;;  %s41_s21 = int_to_ptr.vmem [resolvable:$true] %s40_s21 }
  0x25   :  { %p364_p3 = scmp.lt.u32.totalorder %s360_s25, %s553_s2 }
  0x27   :  { %p366_p4 = pnand %p364_p3, %p361_p2 }
  0x29   :  { %369 = shalt.err (!%p366_p4)
}
  0x2a   :  { %s370_s30 = scalar_lea.vmem %s41_s21, 128  ;;  %p375_p6 = scmp.lt.s32.totalorder %s41_s21, %s41_s21 }
  0x2b   :  { %p371_p5 = scmp.ne.s32.totalorder %s41_s21, %s370_s30  ;;  %p376_p7 = scmp.lt.s32.totalorder %s370_s30, %s370_s30 }
  0x2d   :  { %p377_p8 = por %p376_p7, %p375_p6 }
  0x2f   :  { %p378_p9 = pnand %p377_p8, %p371_p5 }
  0x31   :  { %381 = shalt.err (!%p378_p9)
}
  0x32   :  { %s437_s0 = smov 64   ;;  %s438_s24 = smov 4  }
  0x33   :  { %46 = dma.hbm_to_vmem [thread:$0]  %s553_s2, 128, %s41_s21, [#allocation6], %s437_s0, %s437_s0, %s438_s24  }
  0x34   :  { %s439_s9 = smov [#allocation8]   ;;  %s382_s13 = scalar_lea.hbm %s555_s4, 512 }
  0x35   :  { %s54_s10 = sshll.u32 %s439_s9, 4  ;;  %p383_p10 = scmp.ne.s32.totalorder %s555_s4, %s382_s13  ;;  %s55_s10 = int_to_ptr.vmem [resolvable:$true] %s54_s10 }
  0x36   :  { %p386_p11 = scmp.lt.u32.totalorder %s382_s13, %s555_s4 }
  0x38   :  { %p388_p12 = pnand %p386_p11, %p383_p10 }
  0x3a   :  { %391 = shalt.err (!%p388_p12)
}
  0x3b   :  { %s392_s18 = scalar_lea.vmem %s55_s10, 512  ;;  %p397_p0 = scmp.lt.s32.totalorder %s55_s10, %s55_s10 }
  0x3c   :  { %p393_p13 = scmp.ne.s32.totalorder %s55_s10, %s392_s18  ;;  %p398_p1 = scmp.lt.s32.totalorder %s392_s18, %s392_s18 }
  0x3e   :  { %p399_p2 = por %p398_p1, %p397_p0 }
  0x40   :  { %p400_p3 = pnand %p399_p2, %p393_p13 }
  0x42   :  { %403 = shalt.err (!%p400_p3)
}
  0x43   :  { %60 = dma.hbm_to_vmem [thread:$0]  %s555_s4, 512, %s55_s10, [#allocation9], %s437_s0, %s437_s0, %s438_s24  }
  0x44   :  { %426 = dma.done.wait [#allocation3], 64  }
  0x45   :  { %427 = vsyncadd [#allocation3], 4294967232 }
  0x46   :  { %428 = dma.done.wait [#allocation6], 192  }
  0x47   :  { %429 = vsyncadd [#allocation6], 4294967104 }
  0x48   :  { %430 = dma.done.wait [#allocation9], 512  }
  0x49   :  { %431 = vsyncadd [#allocation9], 4294966784  ;;  %v440_v0 = vmov 0.0   ;;  %vm441_vm0 = vmmov 0   ;;  %v307_v1 = vld [vmem:[#allocation7] sm:$0xff]   ;;  %vm92_vm1 = vcmask 130048  }
  0x4a   :  { %280 = vmatprep.subr.bf16.mxu0 %v440_v0  ;;  %282 = vmatprep.mubr.msk.bf16.mxu0 %vm441_vm0, %v440_v0  ;;  %v76_v2 = vld [vmem:[#allocation2] sm:$0xf]  ;;  %v308_v3 = vld [vmem:[#allocation8] sm:$0xff]   ;;  %v309_v4 = vld [vmem:[#allocation8 + $0x8] sm:$0xff]   ;;  %vm177_vm2 = vcmask 523264  }
  0x4b   :  { %286 = vmatprep.subr.bf16.mxu1 %v440_v0  ;;  %294 = vmatprep.mubr.msk.bf16.mxu1 %vm441_vm0, %v440_v0  ;;  %v310_v5 = vld [vmem:[#allocation8 + $0x10] sm:$0xff]   ;;  %v311_v6 = vld [vmem:[#allocation8 + $0x18] sm:$0xff]  }
  0x4c   :  { %281 = vmatpush3.bf16.msra.mxu0 %v307_v1  ;;  %287 = vmatpush3.bf16.msra.mxu1 %v308_v3  ;;  %v264_v7 = vld [vmem:[%s554_s3] ss:$0 sm:$0xff]  ;;  %v236_v35 = vld [vmem:[#allocation5] sm:$0xf]  ;;  %s442_s3 = smov [#allocation10]  }
  0x4d   :  { %288 = vmatprep.subr.bf16.mxu1 %v440_v0  ;;  %v267_v15 = vld [vmem:[%s556_s5] ss:$0 sm:$0xff]  ;;  %v237_v36 = vunpack.c.l.bf16 %v236_v35  ;;  %s253_s5 = sshll.u32 %s442_s3, 4  ;;  %s254_s5 = int_to_ptr.vmem [resolvable:$true] %s253_s5 }
  0x4e   :  { %s404_s22 = scalar_lea.vmem %s254_s5, 64  ;;  %p409_p5 = scmp.lt.s32.totalorder %s254_s5, %s254_s5 }
  0x4f   :  { %283 = vmatmul.mubr.msk.bf16.vlgmr.msra.gmra.mrb[0].mxu0 %vm92_vm1, %v76_v2  ;;  %p405_p4 = scmp.ne.s32.totalorder %s254_s5, %s404_s22  ;;  %p410_p6 = scmp.lt.s32.totalorder %s404_s22, %s404_s22 }
  0x50   :  { %289 = vmatpush3.bf16.msra.mxu1 %v309_v4 }
  0x51   :  { %290 = vmatprep.subr.bf16.mxu1 %v440_v0  ;;  %p411_p7 = por %p410_p6, %p409_p5 }
  0x53   :  { %p412_p8 = pnand %p411_p7, %p405_p4 }
  0x54   :  { %291 = vmatpush3.bf16.msra.mxu1 %v310_v5 }
  0x55   :  { %292 = vmatprep.subr.bf16.mxu1 %v440_v0 }
  0x58   :  { %293 = vmatpush3.bf16.msra.mxu1 %v311_v6 }
 0x122   :  { %v130_v8 = vpop.f32.mrb[0].mxu0 }
 0x123   :  { %v131_v9 = vadd.f32 %v264_v7, %v130_v8  ;;  %v284_v10 = vpop.f32.mrb[1].mxu0 }
 0x124   :  { %v133_v11 = vpop.f32.mrb[2].mxu0 }
 0x125   :  { %v136_v12 = vmax.f32 %v131_v9, 0.0  ;;  %v285_v13 = vpop.f32.mrb[3].mxu0 }
 0x127   :  { %v137_v14 = vpack.c.bf16 %v136_v12, %v136_v12 }
 0x129   :  { %295 = vmatmul.mubr.msk.bf16.vlgmr.msra.gmra.mrb[0].mxu1 %vm177_vm2, %v137_v14 }
 0x1fc   :  { %v215_v16 = vpop.f32.mrb[0].mxu1 }
 0x1fd   :  { %v216_v17 = vadd.f32 %v267_v15, %v215_v16  ;;  %v296_v18 = vpop.f32.mrb[1].mxu1 }
 0x1fe   :  { %v218_v19 = vpop.f32.mrb[2].mxu1 }
 0x1ff   :  { %v222_v20 = vand.u32 2147483647, %v216_v17  ;;  %v297_v21 = vpop.f32.mrb[3].mxu1  ;;  %v221_v32 = vmax.f32 %v216_v17, 0.0 }
 0x201   :  { %v223_v22 = vsub.f32 0.0, %v222_v20 }
 0x203   :  { %v224_v23 = vmul.f32 1.442695, %v223_v22 }
 0x205   :  { %312 = vpow2.f32 %v224_v23 }
 0x20f   :  { %v313_v24 = vpop.eup %312 }
 0x210   :  { %v226_v25 = vadd.f32 1.0, %v313_v24  ;;  %v229_v26 = vmul.f32 -0.5, %v313_v24  ;;  %v232_v28 = vand.u32 2147483647, %v313_v24 }
 0x212   :  { %314 = vlog2.f32 %v226_v25  ;;  %v230_v27 = vadd.f32 1.0, %v229_v26  ;;  %vm233_vm3 = vcmp.lt.f32.partialorder %v232_v28, 0.0004427343 }
 0x214   :  { %v231_v31 = vmul.f32 %v313_v24, %v230_v27 }
 0x21c   :  { %v315_v29 = vpop.eup %314 }
 0x21d   :  { %v228_v30 = vmul.f32 0.6931472, %v315_v29 }
 0x21f   :  { %v234_v33 = vsel %vm233_vm3, %v231_v31, %v228_v30 }
 0x220   :  { %v235_v34 = vadd.f32 %v234_v33, %v221_v32 }
 0x222   :  { %239 = vrot.lane.b32.xlu0 %v235_v34, %s437_s0 }
 0x294   :  { %v240_v37 = vpop.permute.xlu0 %239 }
 0x295   :  { %v242_v38 = vmul.f32 %v240_v37, %v237_v36 }
 0x297   :  { %v243_v39 = vadd.f32 %v242_v38, %v216_v17 }
 0x299   :  { %v244_v40 = vsel %vm177_vm2, %v243_v39, %v235_v34 }
 0x29a   :  { %v245_v41 = vpack.c.bf16 %v244_v40, %v244_v40 }
 0x29c   :  { %246 = vst [vmem:[#allocation10] sm:$0xf] %v245_v41 }
 0x29d   :  { %415 = shalt.err (!%p412_p8)
}
 0x29e   :  { %s416_s26 = scalar_lea.hbm %s557_s6, 64 }
 0x29f   :  { %p417_p9 = scmp.ne.s32.totalorder %s557_s6, %s416_s26  ;;  %p420_p10 = scmp.lt.u32.totalorder %s416_s26, %s557_s6 }
 0x2a1   :  { %p422_p11 = pnand %p420_p10, %p417_p9 }
 0x2a3   :  { %425 = shalt.err (!%p422_p11)
}
 0x2a4   :  { %256 = dma.vmem_to_hbm [thread:$0]  %s254_s5, 64, %s557_s6, [#allocation4]  }
 0x2a5   :  { %432 = dma.done.wait [#allocation4], 64  }
 0x2a6   :  { %433 = vsyncadd [#allocation4], 4294967232 }
 0x2a7   :  { %260 = vsyncpa [#allocation3], 1 }
 0x2a8   :  { %261 = vsyncpa [#allocation6], 1 }
 0x2a9   :  { %262 = vsyncpa [#allocation9], 1 }
 0x2aa   :  { %263 = vsyncpa [#allocation4], 1 }

</bundles_post_ra>
